<compile_context>
chip_gen: v7x
topology: tpu7x:2x2x1
jax: 0.10.0
libtpu: 0.0.40
codegen_flags: <defaults>
</compile_context>

<pallas_src>
import math
import functools

import jax
import jax.numpy as jnp
from jax import lax
from jax.experimental import pallas as pl
from jax.experimental.pallas import tpu as pltpu


# ---------------------------------------------------------------------------
# Kernels
# ---------------------------------------------------------------------------

def _noisy_linear_train_kernel(x_ref, wmu_ref, wsig_ref, eout_ref, ein_ref,
                               bmu_ref, bsig_ref, beps_ref, o_ref, acc_ref):
    """Training mode: fused noise combine (VPU) + matmul (MXU) + bias epilogue."""
    k = pl.program_id(2)

    @pl.when(k == 0)
    def _():
        acc_ref[...] = jnp.zeros_like(acc_ref)

    # Rank-1 factorized noise tile: weight_epsilon[j,k] = eps_out (tn,1) * eps_in (1,tk)
    w = wmu_ref[...] + wsig_ref[...] * (eout_ref[...] * ein_ref[...])     # (tn, tk)
    # Contract last dims of x (tm, tk) and w (tn, tk) -> (tm, tn); no transpose.
    acc_ref[...] += lax.dot_general(
        x_ref[...], w,
        dimension_numbers=(((1,), (1,)), ((), ())),
        preferred_element_type=jnp.float32)

    @pl.when(k == pl.num_programs(2) - 1)
    def _():
        bias = bmu_ref[...] + bsig_ref[...] * beps_ref[...]               # (1, tn)
        o_ref[...] = (acc_ref[...] + bias).astype(o_ref.dtype)


def _mu_linear_kernel(x_ref, wmu_ref, bmu_ref, o_ref, acc_ref):
    """Eval mode: plain linear with mu parameters only."""
    k = pl.program_id(2)

    @pl.when(k == 0)
    def _():
        acc_ref[...] = jnp.zeros_like(acc_ref)

    acc_ref[...] += lax.dot_general(
        x_ref[...], wmu_ref[...],
        dimension_numbers=(((1,), (1,)), ((), ())),
        preferred_element_type=jnp.float32)

    @pl.when(k == pl.num_programs(2) - 1)
    def _():
        o_ref[...] = (acc_ref[...] + bmu_ref[...]).astype(o_ref.dtype)


# ---------------------------------------------------------------------------
# Wrapper
# ---------------------------------------------------------------------------

def _round_up(x, m):
    return ((x + m - 1) // m) * m


def _pick_tile(dim_padded, max_tile, align):
    """Largest multiple of `align` that divides dim_padded and is <= max_tile."""
    t = min(max_tile, dim_padded)
    t = (t // align) * align
    while dim_padded % t != 0:
        t -= align
    return t


@functools.partial(jax.jit, static_argnames=("training",))
def noisy_linear(x, weight_mu, weight_sigma, eps_in, eps_out,
                 bias_mu, bias_sigma, bias_epsilon, training=True):
    """NoisyLinear forward.

    x            : (B, in_features) f32
    weight_mu/sigma : (out_features, in_features) f32
    eps_in       : (in_features,)  f32   \  weight_epsilon == outer(eps_out, eps_in)
    eps_out      : (out_features,) f32   /  (as produced by reset_noise)
    bias_mu/sigma/epsilon : (out_features,) f32
    """
    B, K = x.shape
    N, _ = weight_mu.shape

    # Pad to TPU-friendly shapes (lanes=128, sublanes=8). Zero padding is
    # harmless for the matmul; padded output rows/cols are sliced off.
    M_pad = _round_up(B, 8)
    K_pad = _round_up(K, 128)
    N_pad = _round_up(N, 128)

    # 512-class weight tiles: 3 weight-sized streams x 2 buffers stays well
    # inside v7x's 64 MiB VMEM; tm capped at 256 sublanes.
    tm = _pick_tile(M_pad, 256, 8)
    tk = _pick_tile(K_pad, 512, 128)
    tn = _pick_tile(N_pad, 512, 128)
    grid = (M_pad // tm, N_pad // tn, K_pad // tk)

    x_p = jnp.pad(x, ((0, M_pad - B), (0, K_pad - K)))
    wmu_p = jnp.pad(weight_mu, ((0, N_pad - N), (0, K_pad - K)))
    bmu_p = jnp.pad(bias_mu, (0, N_pad - N)).reshape(1, N_pad)

    compiler_params = pltpu.CompilerParams(
        dimension_semantics=("parallel", "parallel", "arbitrary"))

    if not training:
        # Eval: mu-only kernel; never touches sigma / epsilon in HBM.
        out = pl.pallas_call(
            _mu_linear_kernel,
            out_shape=jax.ShapeDtypeStruct((M_pad, N_pad), jnp.float32),
            grid_spec=pltpu.PrefetchScalarGridSpec(
                num_scalar_prefetch=0,
                grid=grid,
                in_specs=[
                    pl.BlockSpec((tm, tk), lambda i, j, k: (i, k)),   # x
                    pl.BlockSpec((tn, tk), lambda i, j, k: (j, k)),   # weight_mu
                    pl.BlockSpec((1, tn), lambda i, j, k: (0, j)),    # bias_mu
                ],
                out_specs=pl.BlockSpec((tm, tn), lambda i, j, k: (i, j)),
                scratch_shapes=[pltpu.VMEM((tm, tn), jnp.float32)],
            ),
            compiler_params=compiler_params,
            cost_estimate=pl.CostEstimate(
                flops=2 * M_pad * N_pad * K_pad,
                transcendentals=0,
                bytes_accessed=4 * (N_pad * K_pad + M_pad * K_pad
                                    + M_pad * N_pad + N_pad)),
        )(x_p, wmu_p, bmu_p)
        return out[:B, :N]

    wsig_p = jnp.pad(weight_sigma, ((0, N_pad - N), (0, K_pad - K)))
    ein_p = jnp.pad(eps_in, (0, K_pad - K)).reshape(1, K_pad)
    eout_p = jnp.pad(eps_out, (0, N_pad - N)).reshape(N_pad, 1)
    bsig_p = jnp.pad(bias_sigma, (0, N_pad - N)).reshape(1, N_pad)
    beps_p = jnp.pad(bias_epsilon, (0, N_pad - N)).reshape(1, N_pad)

    out = pl.pallas_call(
        _noisy_linear_train_kernel,
        out_shape=jax.ShapeDtypeStruct((M_pad, N_pad), jnp.float32),
        grid_spec=pltpu.PrefetchScalarGridSpec(
            num_scalar_prefetch=0,
            grid=grid,
            in_specs=[
                pl.BlockSpec((tm, tk), lambda i, j, k: (i, k)),   # x
                pl.BlockSpec((tn, tk), lambda i, j, k: (j, k)),   # weight_mu
                pl.BlockSpec((tn, tk), lambda i, j, k: (j, k)),   # weight_sigma
                pl.BlockSpec((tn, 1), lambda i, j, k: (j, 0)),    # eps_out
                pl.BlockSpec((1, tk), lambda i, j, k: (0, k)),    # eps_in
                pl.BlockSpec((1, tn), lambda i, j, k: (0, j)),    # bias_mu
                pl.BlockSpec((1, tn), lambda i, j, k: (0, j)),    # bias_sigma
                pl.BlockSpec((1, tn), lambda i, j, k: (0, j)),    # bias_epsilon
            ],
            out_specs=pl.BlockSpec((tm, tn), lambda i, j, k: (i, j)),
            scratch_shapes=[pltpu.VMEM((tm, tn), jnp.float32)],
        ),
        compiler_params=compiler_params,
        cost_estimate=pl.CostEstimate(
            flops=2 * M_pad * N_pad * K_pad,
            transcendentals=0,
            bytes_accessed=4 * (2 * N_pad * K_pad + M_pad * K_pad
                                + M_pad * N_pad + K_pad + 4 * N_pad)),
    )(x_p, wmu_p, wsig_p, eout_p, ein_p, bmu_p, bsig_p, beps_p)
    return out[:B, :N]


# ---------------------------------------------------------------------------
# Parameter / noise init (deterministic re-implementation of the PyTorch module)
# ---------------------------------------------------------------------------

def _scale_noise(key, size):
    # x = randn(size); x = sign(x) * sqrt(|x|)   (factorized Gaussian noise)
    x = jax.random.normal(key, (size,), dtype=jnp.float32)
    return jnp.sign(x) * jnp.sqrt(jnp.abs(x))


def init_noisy_linear_params(key, in_features, out_features, std_init=0.001):
    """reset_parameters() + reset_noise(); noise kept in rank-1 factored form."""
    k_wmu, k_bmu, k_ein, k_eout, k_beps = jax.random.split(key, 5)
    mu_range = 1.0 / math.sqrt(in_features)

    weight_mu = jax.random.uniform(
        k_wmu, (out_features, in_features), jnp.float32, -mu_range, mu_range)
    weight_sigma = jnp.full((out_features, in_features),
                            std_init / math.sqrt(in_features), jnp.float32)
    bias_mu = jax.random.uniform(
        k_bmu, (out_features,), jnp.float32, -mu_range, mu_range)
    bias_sigma = jnp.full((out_features,),
                          std_init / math.sqrt(out_features), jnp.float32)

    eps_in = _scale_noise(k_ein, in_features)     # weight_epsilon = outer(eps_out, eps_in)
    eps_out = _scale_noise(k_eout, out_features)
    bias_epsilon = _scale_noise(k_beps, out_features)

    return dict(weight_mu=weight_mu, weight_sigma=weight_sigma,
                bias_mu=bias_mu, bias_sigma=bias_sigma,
                eps_in=eps_in, eps_out=eps_out, bias_epsilon=bias_epsilon)


# ---------------------------------------------------------------------------
# Self-test
# ---------------------------------------------------------------------------

if __name__ == "__main__":
    def run_case(key, batch, in_features, out_features, tol):
        k_params, k_x = jax.random.split(key)
        params = init_noisy_linear_params(k_params, in_features, out_features)
        x = jax.random.normal(k_x, (batch, in_features), dtype=jnp.float32)

        # Training-mode forward (noise applied) via the Pallas kernel.
        y = noisy_linear(x, params["weight_mu"], params["weight_sigma"],
                         params["eps_in"], params["eps_out"],
                         params["bias_mu"], params["bias_sigma"],
                         params["bias_epsilon"], training=True)
        y = jax.block_until_ready(y)

        w_ref = (params["weight_mu"]
                 + params["weight_sigma"]
                 * jnp.outer(params["eps_out"], params["eps_in"]))
        b_ref = params["bias_mu"] + params["bias_sigma"] * params["bias_epsilon"]
        y_ref = x @ w_ref.T + b_ref
        assert y.shape == (batch, out_features)
        assert jnp.allclose(y, y_ref, atol=tol, rtol=tol), \
            float(jnp.max(jnp.abs(y - y_ref)))

        # Eval-mode forward (mu only) via the mu-only kernel.
        y_eval = noisy_linear(x, params["weight_mu"], params["weight_sigma"],
                              params["eps_in"], params["eps_out"],
                              params["bias_mu"], params["bias_sigma"],
                              params["bias_epsilon"], training=False)
        y_eval = jax.block_until_ready(y_eval)
        y_eval_ref = x @ params["weight_mu"].T + params["bias_mu"]
        assert jnp.allclose(y_eval, y_eval_ref, atol=tol, rtol=tol), \
            float(jnp.max(jnp.abs(y_eval - y_eval_ref)))

    key = jax.random.PRNGKey(0)
    k1, k2 = jax.random.split(key)
    # Toy shape (single grid step, padded to 128-lane tiles).
    run_case(k1, batch=8, in_features=32, out_features=64, tol=1e-4)
    # Larger shape exercising K-accumulation and multi-tile N (grid > 1).
    run_case(k2, batch=32, in_features=1024, out_features=640, tol=2e-3)

    print("KERNEL_OK")
</pallas_src>

<mosaic_0001>
module attributes {stable_mosaic.version = 11 : i64} {
  func.func @_noisy_linear_train_kernel(%arg0: i32, %arg1: i32, %arg2: i32, %arg3: memref<8x128xf32, #tpu.memory_space<vmem>>, %arg4: memref<128x128xf32, #tpu.memory_space<vmem>>, %arg5: memref<128x128xf32, #tpu.memory_space<vmem>>, %arg6: memref<128x1xf32, #tpu.memory_space<vmem>>, %arg7: memref<1x128xf32, #tpu.memory_space<vmem>>, %arg8: memref<1x128xf32, #tpu.memory_space<vmem>>, %arg9: memref<1x128xf32, #tpu.memory_space<vmem>>, %arg10: memref<1x128xf32, #tpu.memory_space<vmem>>, %arg11: memref<8x128xf32, #tpu.memory_space<vmem>>, %arg12: memref<8x128xf32, #tpu.memory_space<vmem>>) attributes {dimension_semantics = [#tpu.dimension_semantics<parallel>, #tpu.dimension_semantics<parallel>, #tpu.dimension_semantics<arbitrary>], iteration_bounds = array<i64: 1, 1, 1>, scalar_prefetch = 0 : i64, scratch_operands = 1 : i64, tpu.core_type = #tpu.core_type<tc>, window_params = [{transform_indices = @transform_0, window_bounds = array<i64: 8, 128>}, {transform_indices = @transform_1, window_bounds = array<i64: 128, 128>}, {transform_indices = @transform_2, window_bounds = array<i64: 128, 128>}, {transform_indices = @transform_3, window_bounds = array<i64: 128, 1>}, {transform_indices = @transform_4, window_bounds = array<i64: 1, 128>}, {transform_indices = @transform_5, window_bounds = array<i64: 1, 128>}, {transform_indices = @transform_6, window_bounds = array<i64: 1, 128>}, {transform_indices = @transform_7, window_bounds = array<i64: 1, 128>}, {transform_indices = @transform_8, window_bounds = array<i64: 8, 128>}]} {
    %c0_i32 = arith.constant 0 : i32
    %0 = arith.cmpi eq, %arg2, %c0_i32 : i32
    %1 = arith.extui %0 : i1 to i32
    %c0_i32_0 = arith.constant 0 : i32
    %2 = arith.cmpi ne, %1, %c0_i32_0 : i32
    scf.if %2 {
      %cst_16 = arith.constant 0.000000e+00 : f32
      %20 = vector.broadcast %cst_16 : f32 to vector<8x128xf32>
      %c0_17 = arith.constant 0 : index
      %c0_18 = arith.constant 0 : index
      %21 = vector.load %arg12[%c0_17, %c0_18] : memref<8x128xf32, #tpu.memory_space<vmem>>, vector<8x128xf32>
      tpu.vector_store %arg12[%c0_17, %c0_18], %20 {strides = array<i32>} : memref<8x128xf32, #tpu.memory_space<vmem>>, vector<8x128xf32>,
    } else {
    }
    %c0 = arith.constant 0 : index
    %c0_1 = arith.constant 0 : index
    %3 = vector.load %arg4[%c0, %c0_1] : memref<128x128xf32, #tpu.memory_space<vmem>>, vector<128x128xf32>
    %c0_2 = arith.constant 0 : index
    %c0_3 = arith.constant 0 : index
    %4 = vector.load %arg5[%c0_2, %c0_3] : memref<128x128xf32, #tpu.memory_space<vmem>>, vector<128x128xf32>
    %c0_4 = arith.constant 0 : index
    %c0_5 = arith.constant 0 : index
    %5 = vector.load %arg6[%c0_4, %c0_5] : memref<128x1xf32, #tpu.memory_space<vmem>>, vector<128x1xf32>
    %c0_6 = arith.constant 0 : index
    %c0_7 = arith.constant 0 : index
    %6 = vector.load %arg7[%c0_6, %c0_7] : memref<1x128xf32, #tpu.memory_space<vmem>>, vector<1x128xf32>
    %7 = vector.broadcast %5 : vector<128x1xf32> to vector<128x128xf32>
    %8 = vector.broadcast %6 : vector<1x128xf32> to vector<128x128xf32>
    %9 = arith.mulf %7, %8 : vector<128x128xf32>
    %10 = arith.mulf %4, %9 : vector<128x128xf32>
    %11 = arith.addf %3, %10 : vector<128x128xf32>
    %c0_8 = arith.constant 0 : index
    %c0_9 = arith.constant 0 : index
    %12 = vector.load %arg12[%c0_8, %c0_9] : memref<8x128xf32, #tpu.memory_space<vmem>>, vector<8x128xf32>
    %c0_10 = arith.constant 0 : index
    %c0_11 = arith.constant 0 : index
    %13 = vector.load %arg3[%c0_10, %c0_11] : memref<8x128xf32, #tpu.memory_space<vmem>>, vector<8x128xf32>
    %cst = arith.constant dense<0.000000e+00> : vector<8x128xf32>
    %14 = tpu.matmul %13, %11, %cst {dimension_numbers = #tpu.dot_dimension_numbers<[1], [1], [0], [0], [0, 0, 1, 0], [], []>} : vector<8x128xf32>, vector<128x128xf32>, vector<8x128xf32> -> vector<8x128xf32>
    %15 = arith.addf %12, %14 : vector<8x128xf32>
    %c0_12 = arith.constant 0 : index
    %c0_13 = arith.constant 0 : index
    %16 = vector.load %arg12[%c0_12, %c0_13] : memref<8x128xf32, #tpu.memory_space<vmem>>, vector<8x128xf32>
    tpu.vector_store %arg12[%c0_12, %c0_13], %15 {strides = array<i32>} : memref<8x128xf32, #tpu.memory_space<vmem>>, vector<8x128xf32>,
    %c0_i32_14 = arith.constant 0 : i32
    %17 = arith.cmpi eq, %arg2, %c0_i32_14 : i32
    %18 = arith.extui %17 : i1 to i32
    %c0_i32_15 = arith.constant 0 : i32
    %19 = arith.cmpi ne, %18, %c0_i32_15 : i32
    scf.if %19 {
      %c0_16 = arith.constant 0 : index
      %c0_17 = arith.constant 0 : index
      %20 = vector.load %arg8[%c0_16, %c0_17] : memref<1x128xf32, #tpu.memory_space<vmem>>, vector<1x128xf32>
      %c0_18 = arith.constant 0 : index
      %c0_19 = arith.constant 0 : index
      %21 = vector.load %arg9[%c0_18, %c0_19] : memref<1x128xf32, #tpu.memory_space<vmem>>, vector<1x128xf32>
      %c0_20 = arith.constant 0 : index
      %c0_21 = arith.constant 0 : index
      %22 = vector.load %arg10[%c0_20, %c0_21] : memref<1x128xf32, #tpu.memory_space<vmem>>, vector<1x128xf32>
      %23 = arith.mulf %21, %22 : vector<1x128xf32>
      %24 = arith.addf %20, %23 : vector<1x128xf32>
      %c0_22 = arith.constant 0 : index
      %c0_23 = arith.constant 0 : index
      %25 = vector.load %arg12[%c0_22, %c0_23] : memref<8x128xf32, #tpu.memory_space<vmem>>, vector<8x128xf32>
      %26 = vector.broadcast %24 : vector<1x128xf32> to vector<8x128xf32>
      %27 = arith.addf %25, %26 : vector<8x128xf32>
      %c0_24 = arith.constant 0 : index
      %c0_25 = arith.constant 0 : index
      %28 = vector.load %arg11[%c0_24, %c0_25] : memref<8x128xf32, #tpu.memory_space<vmem>>, vector<8x128xf32>
      tpu.vector_store %arg11[%c0_24, %c0_25], %27 {strides = array<i32>} : memref<8x128xf32, #tpu.memory_space<vmem>>, vector<8x128xf32>,
    } else {
    }
    return
  }
  func.func @transform_0(%arg0: i32, %arg1: i32, %arg2: i32) -> (i32, i32) {
    %c0_i32 = arith.constant 0 : i32
    return %arg0, %arg2 : i32, i32
  }
  func.func @transform_1(%arg0: i32, %arg1: i32, %arg2: i32) -> (i32, i32) {
    %c0_i32 = arith.constant 0 : i32
    return %arg1, %arg2 : i32, i32
  }
  func.func @transform_2(%arg0: i32, %arg1: i32, %arg2: i32) -> (i32, i32) {
    %c0_i32 = arith.constant 0 : i32
    return %arg1, %arg2 : i32, i32
  }
  func.func @transform_3(%arg0: i32, %arg1: i32, %arg2: i32) -> (i32, i32) {
    %c0_i32 = arith.constant 0 : i32
    %c0_i32_0 = arith.constant 0 : i32
    return %arg1, %c0_i32 : i32, i32
  }
  func.func @transform_4(%arg0: i32, %arg1: i32, %arg2: i32) -> (i32, i32) {
    %c0_i32 = arith.constant 0 : i32
    %c0_i32_0 = arith.constant 0 : i32
    return %c0_i32, %arg2 : i32, i32
  }
  func.func @transform_5(%arg0: i32, %arg1: i32, %arg2: i32) -> (i32, i32) {
    %c0_i32 = arith.constant 0 : i32
    %c0_i32_0 = arith.constant 0 : i32
    return %c0_i32, %arg1 : i32, i32
  }
  func.func @transform_6(%arg0: i32, %arg1: i32, %arg2: i32) -> (i32, i32) {
    %c0_i32 = arith.constant 0 : i32
    %c0_i32_0 = arith.constant 0 : i32
    return %c0_i32, %arg1 : i32, i32
  }
  func.func @transform_7(%arg0: i32, %arg1: i32, %arg2: i32) -> (i32, i32) {
    %c0_i32 = arith.constant 0 : i32
    %c0_i32_0 = arith.constant 0 : i32
    return %c0_i32, %arg1 : i32, i32
  }
  func.func @transform_8(%arg0: i32, %arg1: i32, %arg2: i32) -> (i32, i32) {
    %c0_i32 = arith.constant 0 : i32
    return %arg0, %arg1 : i32, i32
  }
}

</mosaic_0001>

<bundles_post_ra>
// kernel: noisy_linear.1
= control target key start
LH: loop header
LB: loop body
LE: loop exit
PB: predicated region body
PF: predicated region fallthrough
CT: control target
= control target key end

     0   :  { %v431_v2 = vmov 0   ;;  %s678_s0 = inlined_call_operand.vmem [shape: f32[8,128], index: 0, kind: input, shape index: {}]   ;;  %s679_s1 = inlined_call_operand.vmem [shape: f32[128,128], index: 1, kind: input, shape index: {}]   ;;  %s680_s2 = inlined_call_operand.vmem [shape: f32[128,128], index: 2, kind: input, shape index: {}]   ;;  %s681_s3 = inlined_call_operand.vmem [shape: f32[128,1], index: 3, kind: input, shape index: {}]   ;;  %s682_s4 = inlined_call_operand.vmem [shape: f32[1,128], index: 4, kind: input, shape index: {}]   ;;  %s683_s5 = inlined_call_operand.vmem [shape: f32[1,128], index: 5, kind: input, shape index: {}]   ;;  %s684_s6 = inlined_call_operand.vmem [shape: f32[1,128], index: 6, kind: input, shape index: {}]   ;;  %s685_s7 = inlined_call_operand.vmem [shape: f32[1,128], index: 7, kind: input, shape index: {}]   ;;  %s686_s8 = inlined_call_operand.hbm [shape: f32[8,128], index: 8, kind: output, shape index: {}]  }
   0x1   :  { %v69_v0 = vld [vmem:[%s681_s3 + $0x10] sm:$0xff]  ;;  %v67_v1 = vld [vmem:[%s681_s3] sm:$0xff]  ;;  %406 = vset.pattern.permute.xlu1 %v431_v2  ;;  %405 = vset.pattern.permute.xlu0 %v431_v2  ;;  %v70_v3 = vld [vmem:[%s681_s3 + $0x18] sm:$0xff] }
   0x2   :  { %96 = vperm.xlu1 %406, %v69_v0   ;;  %86 = vperm.xlu0 %405, %v67_v1   ;;  %v68_v4 = vld [vmem:[%s681_s3 + $0x8] sm:$0xff]  ;;  %v71_v6 = vld [vmem:[%s681_s3 + $0x20] sm:$0xff] }
   0x3   :  { %v72_v5 = vld [vmem:[%s681_s3 + $0x28] sm:$0xff] }
   0x6   :  { %101 = vperm.xlu1 %406, %v70_v3   ;;  %91 = vperm.xlu0 %405, %v68_v4  }
   0x7   :  { %13 = vsyncpa [#allocation4], 0  ;;  %v74_v7 = vld [vmem:[%s681_s3 + $0x38] sm:$0xff]  ;;  %v73_v8 = vld [vmem:[%s681_s3 + $0x30] sm:$0xff]  ;;  %v432_v9 = vmov 0.0|0.0   ;;  %vm433_vm0 = vmmov 0  }
   0x8   :  { %376 = vmatprep.subr.bf16.mxu0 %v432_v9  ;;  %v76_v10 = vld [vmem:[%s681_s3 + $0x48] sm:$0xff]  ;;  %v75_v11 = vld [vmem:[%s681_s3 + $0x40] sm:$0xff]  ;;  %v78_v12 = vld [vmem:[%s681_s3 + $0x58] sm:$0xff]  ;;  %v434_v18 = vmov 0.0  }
   0x9   :  { %v77_v13 = vld [vmem:[%s681_s3 + $0x50] sm:$0xff]  ;;  %v80_v14 = vld [vmem:[%s681_s3 + $0x68] sm:$0xff]  ;;  %v79_v15 = vld [vmem:[%s681_s3 + $0x60] sm:$0xff]  ;;  %373 = vmatprep.mubr.msk.f32.mxu0 %vm433_vm0, %v434_v18 }
   0xa   :  { %111 = vperm.xlu1 %406, %v72_v5   ;;  %106 = vperm.xlu0 %405, %v71_v6   ;;  %v82_v16 = vld [vmem:[%s681_s3 + $0x78] sm:$0xff]  ;;  %v81_v17 = vld [vmem:[%s681_s3 + $0x70] sm:$0xff]  ;;  %v533_v19 = vld [vmem:[%s682_s4] ss:$0 sm:$0xff] }
   0xb   :  { %v51_v23 = vld [vmem:[%s680_s2] sm:$0xff]  ;;  %v52_v25 = vld [vmem:[%s680_s2 + $0x8] sm:$0xff]  ;;  %v53_v34 = vld [vmem:[%s680_s2 + $0x10] sm:$0xff] }
   0xc   :  { %v35_v29 = vld [vmem:[%s679_s1] sm:$0xff]  ;;  %v36_v30 = vld [vmem:[%s679_s1 + $0x8] sm:$0xff]  ;;  %v54_v35 = vld [vmem:[%s680_s2 + $0x18] sm:$0xff] }
   0xd   :  { %v37_v41 = vld [vmem:[%s679_s1 + $0x10] sm:$0xff]  ;;  %v38_v42 = vld [vmem:[%s679_s1 + $0x18] sm:$0xff]  ;;  %v56_v49 = vld [vmem:[%s680_s2 + $0x28] sm:$0xff] }
   0xe   :  { %121 = vperm.xlu1 %406, %v74_v7   ;;  %116 = vperm.xlu0 %405, %v73_v8   ;;  %v55_v50 = vld [vmem:[%s680_s2 + $0x20] sm:$0xff]  ;;  %v40_v54 = vld [vmem:[%s679_s1 + $0x28] sm:$0xff]  ;;  %v58_v62 = vld [vmem:[%s680_s2 + $0x38] sm:$0xff] }
   0xf   :  { %v39_v55 = vld [vmem:[%s679_s1 + $0x20] sm:$0xff]  ;;  %v57_v63 = vld [vmem:[%s680_s2 + $0x30] sm:$0xff]  ;;  %v42_v3 = vld [vmem:[%s679_s1 + $0x38] sm:$0xff] }
  0x10   :  { %v41_v4 = vld [vmem:[%s679_s1 + $0x30] sm:$0xff]  ;;  %v43_v18 = vld [vmem:[%s679_s1 + $0x40] sm:$0xff] }
  0x12   :  { %131 = vperm.xlu1 %406, %v76_v10   ;;  %126 = vperm.xlu0 %405, %v75_v11  }
  0x16   :  { %141 = vperm.xlu1 %406, %v78_v12   ;;  %136 = vperm.xlu0 %405, %v77_v13   ;;  %v60_v12 = vld [vmem:[%s680_s2 + $0x48] sm:$0xff]  ;;  %v59_v13 = vld [vmem:[%s680_s2 + $0x40] sm:$0xff] }
  0x1a   :  { %151 = vperm.xlu1 %406, %v80_v14   ;;  %146 = vperm.xlu0 %405, %v79_v15  }
  0x1e   :  { %161 = vperm.xlu1 %406, %v82_v16   ;;  %156 = vperm.xlu0 %405, %v81_v17   ;;  %v44_v17 = vld [vmem:[%s679_s1 + $0x48] sm:$0xff] }
  0x81   :  { %v97_v20 = vpop.permute.xlu1 %96  ;;  %v87_v21 = vpop.permute.xlu0 %86 }
  0x82   :  { %v170_v22 = vmul.f32 %v533_v19, %v87_v21  ;;  %v172_v31 = vmul.f32 %v533_v19, %v97_v20 }
  0x84   :  { %v186_v26 = vmul.f32 %v170_v22, %v51_v23  ;;  %v188_v38 = vmul.f32 %v172_v31, %v53_v34  ;;  %v46_v31 = vld [vmem:[%s679_s1 + $0x58] sm:$0xff] }
  0x85   :  { %v92_v24 = vpop.permute.xlu0 %91  ;;  %v102_v28 = vpop.permute.xlu1 %101 }
  0x86   :  { %v171_v27 = vmul.f32 %v533_v19, %v92_v24  ;;  %v173_v32 = vmul.f32 %v533_v19, %v102_v28  ;;  %v202_v36 = vadd.f32 %v186_v26, %v35_v29  ;;  %v204_v45 = vadd.f32 %v188_v38, %v37_v41  ;;  %v62_v26 = vld [vmem:[%s680_s2 + $0x58] sm:$0xff] }
  0x88   :  { %v187_v33 = vmul.f32 %v171_v27, %v52_v25  ;;  %v189_v39 = vmul.f32 %v173_v32, %v54_v35  ;;  %v61_v27 = vld [vmem:[%s680_s2 + $0x50] sm:$0xff] }
  0x89   :  { %v112_v43 = vpop.permute.xlu1 %111  ;;  %v107_v44 = vpop.permute.xlu0 %106  ;;  %v45_v32 = vld [vmem:[%s679_s1 + $0x50] sm:$0xff] }
  0x8a   :  { %v203_v37 = vadd.f32 %v187_v33, %v36_v30  ;;  %v205_v46 = vadd.f32 %v189_v39, %v38_v42  ;;  %v175_v47 = vmul.f32 %v533_v19, %v112_v43  ;;  %v174_v48 = vmul.f32 %v533_v19, %v107_v44  ;;  %v64_v39 = vld [vmem:[%s680_s2 + $0x68] sm:$0xff] }
  0x8b   :  { %v48_v44 = vld [vmem:[%s679_s1 + $0x68] sm:$0xff] }
  0x8c   :  { %v377_v40 = vpack.c.bf16 %v203_v37, %v202_v36  ;;  %v191_v51 = vmul.f32 %v175_v47, %v56_v49  ;;  %v190_v52 = vmul.f32 %v174_v48, %v55_v50  ;;  %v380_v53 = vpack.c.bf16 %v205_v46, %v204_v45  ;;  %v47_v45 = vld [vmem:[%s679_s1 + $0x60] sm:$0xff] }
  0x8d   :  { %v122_v56 = vpop.permute.xlu1 %121  ;;  %v117_v57 = vpop.permute.xlu0 %116 }
  0x8e   :  { %378 = vmatpush3.bf16.xpose.msra.mxu0 %v377_v40  ;;  %v207_v58 = vadd.f32 %v191_v51, %v40_v54  ;;  %v206_v59 = vadd.f32 %v190_v52, %v39_v55  ;;  %v177_v60 = vmul.f32 %v533_v19, %v122_v56  ;;  %v176_v61 = vmul.f32 %v533_v19, %v117_v57  ;;  %v63_v40 = vld [vmem:[%s680_s2 + $0x60] sm:$0xff]  ;;  %v66_v52 = vld [vmem:[%s680_s2 + $0x78] sm:$0xff] }
  0x8f   :  { %379 = vmatprep.subr.bf16.mxu0 %v432_v9  ;;  %v50_v57 = vld [vmem:[%s679_s1 + $0x78] sm:$0xff] }
  0x90   :  { %v193_v0 = vmul.f32 %v177_v60, %v58_v62  ;;  %v192_v1 = vmul.f32 %v176_v61, %v57_v63  ;;  %v383_v2 = vpack.c.bf16 %v207_v58, %v206_v59  ;;  %v49_v58 = vld [vmem:[%s679_s1 + $0x70] sm:$0xff]  ;;  %v219_v61 = vld [vmem:[%s678_s0] sm:$0xff]  ;;  %v302_v62 = vlaneseq  ;;  %s435_s0 = smov [#allocation3]  }
  0x91   :  { %v132_v5 = vpop.permute.xlu1 %131  ;;  %v127_v6 = vpop.permute.xlu0 %126  ;;  %v296_v63 = vld [vmem:[%s684_s6] sm:$0x1]  ;;  %s315_s15 = sshll.u32 %s435_s0, 4  ;;  %s316_s15 = int_to_ptr.vmem [resolvable:$true] %s315_s15 }
  0x92   :  { %v209_v7 = vadd.f32 %v193_v0, %v42_v3  ;;  %v208_v8 = vadd.f32 %v192_v1, %v41_v4  ;;  %v179_v10 = vmul.f32 %v533_v19, %v132_v5  ;;  %v178_v11 = vmul.f32 %v533_v19, %v127_v6  ;;  %v297_v0 = vld [vmem:[%s685_s7] sm:$0x1]  ;;  %s407_s6 = scalar_lea.vmem %s316_s15, 128  ;;  %p412_p1 = scmp.lt.s32.totalorder %s316_s15, %s316_s15 }
  0x93   :  { %v298_v1 = vmul.f32 %v297_v0, %v296_v63  ;;  %p408_p0 = scmp.ne.s32.totalorder %s316_s15, %s407_s6  ;;  %p413_p2 = scmp.lt.s32.totalorder %s407_s6, %s407_s6 }
  0x94   :  { %v195_v14 = vmul.f32 %v179_v10, %v60_v12  ;;  %v194_v15 = vmul.f32 %v178_v11, %v59_v13  ;;  %v386_v16 = vpack.c.bf16 %v209_v7, %v208_v8 }
  0x95   :  { %v142_v20 = vpop.permute.xlu1 %141  ;;  %v137_v21 = vpop.permute.xlu0 %136  ;;  %p414_p3 = por %p413_p2, %p412_p1 }
  0x96   :  { %381 = vmatpush3.bf16.xpose.msra.mxu0 %v380_v53  ;;  %v211_v22 = vadd.f32 %v195_v14, %v44_v17  ;;  %v210_v23 = vadd.f32 %v194_v15, %v43_v18  ;;  %v181_v24 = vmul.f32 %v533_v19, %v142_v20  ;;  %v180_v25 = vmul.f32 %v533_v19, %v137_v21  ;;  %v65_v53 = vld [vmem:[%s680_s2 + $0x70] sm:$0xff] }
  0x97   :  { %382 = vmatprep.subr.bf16.mxu0 %v432_v9  ;;  %p415_p4 = pnand %p414_p3, %p408_p0 }
  0x98   :  { %v197_v28 = vmul.f32 %v181_v24, %v62_v26  ;;  %v196_v29 = vmul.f32 %v180_v25, %v61_v27  ;;  %v389_v30 = vpack.c.bf16 %v211_v22, %v210_v23 }
  0x99   :  { %v152_v33 = vpop.permute.xlu1 %151  ;;  %v147_v34 = vpop.permute.xlu0 %146 }
  0x9a   :  { %v213_v35 = vadd.f32 %v197_v28, %v46_v31  ;;  %v212_v36 = vadd.f32 %v196_v29, %v45_v32  ;;  %v183_v37 = vmul.f32 %v533_v19, %v152_v33  ;;  %v182_v38 = vmul.f32 %v533_v19, %v147_v34 }
  0x9c   :  { %v199_v41 = vmul.f32 %v183_v37, %v64_v39  ;;  %v198_v42 = vmul.f32 %v182_v38, %v63_v40  ;;  %v392_v43 = vpack.c.bf16 %v213_v35, %v212_v36 }
  0x9d   :  { %v162_v46 = vpop.permute.xlu1 %161  ;;  %v157_v47 = vpop.permute.xlu0 %156 }
  0x9e   :  { %384 = vmatpush3.bf16.xpose.msra.mxu0 %v383_v2  ;;  %v215_v48 = vadd.f32 %v199_v41, %v48_v44  ;;  %v214_v49 = vadd.f32 %v198_v42, %v47_v45  ;;  %v185_v50 = vmul.f32 %v533_v19, %v162_v46  ;;  %v184_v51 = vmul.f32 %v533_v19, %v157_v47  ;;  %v295_v2 = vld [vmem:[%s683_s5] sm:$0x1] }
  0x9f   :  { %385 = vmatprep.subr.bf16.mxu0 %v432_v9  ;;  %v299_v3 = vadd.f32 %v298_v1, %v295_v2 }
  0xa0   :  { %v201_v54 = vmul.f32 %v185_v50, %v66_v52  ;;  %v200_v55 = vmul.f32 %v184_v51, %v65_v53  ;;  %v395_v56 = vpack.c.bf16 %v215_v48, %v214_v49 }
  0xa2   :  { %v217_v19 = vadd.f32 %v201_v54, %v50_v57  ;;  %v216_v59 = vadd.f32 %v200_v55, %v49_v58 }
  0xa4   :  { %v398_v60 = vpack.c.bf16 %v217_v19, %v216_v59 }
  0xa6   :  { %387 = vmatpush3.bf16.xpose.msra.mxu0 %v386_v16 }
  0xa7   :  { %388 = vmatprep.subr.bf16.mxu0 %v432_v9 }
  0xae   :  { %390 = vmatpush3.bf16.xpose.msra.mxu0 %v389_v30 }
  0xaf   :  { %391 = vmatprep.subr.bf16.mxu0 %v432_v9 }
  0xb6   :  { %393 = vmatpush3.bf16.xpose.msra.mxu0 %v392_v43 }
  0xb7   :  { %394 = vmatprep.subr.bf16.mxu0 %v432_v9 }
  0xbe   :  { %396 = vmatpush3.bf16.xpose.msra.mxu0 %v395_v56 }
  0xbf   :  { %397 = vmatprep.subr.bf16.mxu0 %v432_v9  ;;  %v303_v9 = vshrl.u32 %v302_v62, 7 }
  0xc1   :  { %v304_v4 = vsub.s32 0, %v303_v9 }
  0xc3   :  { %v305_v5 = vrot.slane %v299_v3, %v304_v4 }
  0xc6   :  { %399 = vmatpush3.bf16.xpose.msra.mxu0 %v398_v60 }
  0xcd   :  { %374 = vmatmul.mubr.f32.vlgmr.msra.gmra.mrb[0].mxu0 %v219_v61 }
 0x1a0   :  { %v286_v6 = vpop.f32.mrb[0].mxu0 }
 0x1a1   :  { %v307_v7 = vadd.f32 %v305_v5, %v286_v6  ;;  %v375_v8 = vpop.f32.mrb[1].mxu0 }
 0x1a3   :  { %308 = vst [vmem:[#allocation3] sm:$0xff] %v307_v7 }
 0x1a4   :  { %418 = shalt.err (!%p415_p4)
}
 0x1a5   :  { %s419_s5 = scalar_lea.hbm %s686_s8, 128 }
 0x1a6   :  { %p420_p5 = scmp.ne.s32.totalorder %s686_s8, %s419_s5  ;;  %p423_p6 = scmp.lt.u32.totalorder %s419_s5, %s686_s8 }
 0x1a8   :  { %p425_p7 = pnand %p423_p6, %p420_p5 }
 0x1aa   :  { %428 = shalt.err (!%p425_p7)
}
 0x1ab   :  { %318 = dma.vmem_to_hbm [thread:$0]  %s316_s15, 128, %s686_s8, [#allocation4]  }
 0x1ac   :  { %429 = dma.done.wait [#allocation4], 128  }
 0x1ad   :  { %430 = vsyncadd [#allocation4], 4294967168 }
 0x1ae   :  { %322 = vsyncpa [#allocation4], 1 }

</bundles_post_ra>
